<compile_context>
chip_gen: v7x
topology: tpu7x:2x2x1
jax: 0.10.0
libtpu: 0.0.40
codegen_flags: <defaults>
</compile_context>

<pallas_src>
import math

import jax
import jax.numpy as jnp
from jax.experimental import pallas as pl
from jax.experimental.pallas import tpu as pltpu


# --------------------------------------------------------------------------- #
# VMEM budgeting
# --------------------------------------------------------------------------- #

def _vmem_budget_bytes(frac=0.70, fallback=48 * 1024 * 1024):
    """Usable VMEM budget in bytes.  Fallback is safe on every generation
    (v7x has only 64 MiB physical per TensorCore)."""
    try:
        cap = int(pltpu.get_tpu_info().vmem_capacity_bytes)
        return max(int(cap * frac), 16 * 1024 * 1024)
    except Exception:
        return fallback


def _round_tile(t, n):
    """Clamp a row tile to [8, n]; multiple of 8 unless it covers the full dim."""
    if t >= n:
        return n
    return max(8, (int(t) // 8) * 8)


def _derive_sage_tile(N, Fin, Fout, budget):
    """Row tile tn for the fused SAGE kernel so all double-buffered blocks fit:
    adj f32 (tn,N) x2 + x f32 (N,Fin) x2 + WT/bias x2 + h bf16 (tn,Fout) x2 +
    psum/psq f32 (tn,1) x2 each."""
    fixed = 2 * (N * Fin * 4) + 2 * (Fin * Fout * 4 + Fout * 4)
    per_row = 2 * (N * 4) + 2 * (Fout * 2) + 4 * 4
    avail = int(budget * 0.85) - fixed
    if avail <= per_row * 8:
        # The resident (N, Fin) feature block (nearly) exhausts the budget.
        # TODO(synk): add a contraction-tiled variant (third "arbitrary" grid
        # axis + f32 VMEM accumulator) for graphs where x cannot live in VMEM.
        return _round_tile(8, N)
    return _round_tile(min(avail // per_row, 1024), N)


def _derive_bn_tile(N, Fout, budget):
    per_row = 2 * (Fout * 2) + 2 * (Fout * 4) + 4 * 4
    return _round_tile(min(int(budget * 0.85) // per_row, 2048), N)


# --------------------------------------------------------------------------- #
# Kernels
# --------------------------------------------------------------------------- #

def _sage_fused_kernel(adj_ref, x_ref, wt_ref, b_ref, h_ref, psum_ref, psq_ref):
    """adj (tn,N) f32, x (N,Fin) f32, wt (Fin,Fout) f32, b (1,Fout) f32.
    Casts adj/x to bf16 in-register (no wrapper-side HBM cast pass), aggregates
    on the MXU with f32 accumulation, applies Linear + L2-normalize + ReLU,
    stores h in bf16 and emits per-node partial BN sums over the feature dim."""
    adj_bf = adj_ref[...].astype(jnp.bfloat16)     # exact for 0/1 adjacency
    x_bf = x_ref[...].astype(jnp.bfloat16)
    hn = jnp.dot(adj_bf, x_bf, preferred_element_type=jnp.float32)
    # linear layer: small (tn,Fin)x(Fin,Fout) matmul kept in f32 for accuracy
    h = jnp.dot(hn, wt_ref[...], preferred_element_type=jnp.float32) + b_ref[...]
    # F.normalize(p=2, dim=-1): x / max(||x||, 1e-12) == x * rsqrt(max(ss, 1e-24))
    ss = jnp.sum(h * h, axis=-1, keepdims=True)
    h = h * jax.lax.rsqrt(jnp.maximum(ss, 1e-24))
    # ReLU
    h = jnp.maximum(h, 0.0)
    hb = h.astype(h_ref.dtype)                     # bf16 intermediate (values in [0,1])
    h_ref[...] = hb
    # partial BatchNorm stats, consistent with the values BN will actually scale
    hb32 = hb.astype(jnp.float32)
    psum_ref[...] = jnp.sum(hb32, axis=-1, keepdims=True)
    psq_ref[...] = jnp.sum(hb32 * hb32, axis=-1, keepdims=True)


def _bn_apply_kernel(h_ref, scale_ref, shift_ref, o_ref):
    """Per-node affine: out = h * scale + shift. h (tn,Fout) bf16, scale/shift (tn,1) f32."""
    h = h_ref[...].astype(jnp.float32)
    o_ref[...] = (h * scale_ref[...] + shift_ref[...]).astype(o_ref.dtype)


# --------------------------------------------------------------------------- #
# Wrapper
# --------------------------------------------------------------------------- #

def batched_graphsage(x, adj, W, b, *, use_bn=True, mean=False, add_self=False,
                      gamma=None, beta=None):
    """x: (B,N,Fin) f32, adj: (B,N,N) f32, W: (Fout,Fin) f32, b: (Fout,) f32."""
    B, N, Fin = x.shape
    Fout = W.shape[0]

    # module pre-processing (defaults: both False) -- plain layout/prep glue
    if add_self:
        adj = adj + jnp.eye(N, dtype=adj.dtype)[None]
    if mean:
        # NOTE: 1/degree entries are no longer exact in bf16 (~2^-8 rel. error
        # enters the aggregation) and zero-degree nodes divide by zero, matching torch.
        adj = adj / jnp.sum(adj, axis=-1, keepdims=True)

    adj = adj.astype(jnp.float32)
    x = x.astype(jnp.float32)
    WT = W.T.astype(jnp.float32)                   # (Fin, Fout)
    b2 = b.reshape(1, Fout).astype(jnp.float32)

    budget = _vmem_budget_bytes()
    tn = _derive_sage_tile(N, Fin, Fout, budget)
    n_tiles = pl.cdiv(N, tn)

    cp = pltpu.CompilerParams(
        dimension_semantics=("parallel", "parallel"),
        vmem_limit_bytes=int(budget),
    )

    h, psum, psq = pl.pallas_call(
        _sage_fused_kernel,
        out_shape=(
            jax.ShapeDtypeStruct((B, N, Fout), jnp.bfloat16),   # h intermediate, bf16
            jax.ShapeDtypeStruct((B, N, 1), jnp.float32),
            jax.ShapeDtypeStruct((B, N, 1), jnp.float32),
        ),
        grid_spec=pltpu.PrefetchScalarGridSpec(
            num_scalar_prefetch=0,
            grid=(B, n_tiles),
            in_specs=[
                pl.BlockSpec((None, tn, N), lambda bi, ni: (bi, ni, 0)),    # adj strip (streamed)
                pl.BlockSpec((None, N, Fin), lambda bi, ni: (bi, 0, 0)),    # x, VMEM-resident per batch
                pl.BlockSpec((Fin, Fout), lambda bi, ni: (0, 0)),           # W.T, resident
                pl.BlockSpec((1, Fout), lambda bi, ni: (0, 0)),             # bias, resident
            ],
            out_specs=(
                pl.BlockSpec((None, tn, Fout), lambda bi, ni: (bi, ni, 0)),
                pl.BlockSpec((None, tn, 1), lambda bi, ni: (bi, ni, 0)),
                pl.BlockSpec((None, tn, 1), lambda bi, ni: (bi, ni, 0)),
            ),
        ),
        compiler_params=cp,
    )(adj, x, WT, b2)

    if not use_bn:
        return h.astype(jnp.float32)

    # ---- BatchNorm1d(N), training mode, from the fused partial sums ---------
    # Stats reduce over (B, F) per node; the cross-B reduction of the tiny
    # (B, N, 1) partials is plain XLA glue (negligible next to h traffic).
    cnt = float(B * Fout)
    node_sum = jnp.sum(psum[..., 0], axis=0)                   # (N,)
    node_sq = jnp.sum(psq[..., 0], axis=0)                     # (N,)
    mean_n = node_sum / cnt
    var_n = jnp.maximum(node_sq / cnt - mean_n * mean_n, 0.0)  # biased variance
    inv_n = jax.lax.rsqrt(var_n + 1e-5)
    if gamma is None:
        gamma = jnp.ones((N,), jnp.float32)                    # BN default affine
    if beta is None:
        beta = jnp.zeros((N,), jnp.float32)
    scale = (gamma * inv_n).reshape(N, 1).astype(jnp.float32)
    shift = (beta - mean_n * gamma * inv_n).reshape(N, 1).astype(jnp.float32)

    tb = _derive_bn_tile(N, Fout, budget)
    out = pl.pallas_call(
        _bn_apply_kernel,
        out_shape=jax.ShapeDtypeStruct((B, N, Fout), jnp.float32),
        grid_spec=pltpu.PrefetchScalarGridSpec(
            num_scalar_prefetch=0,
            grid=(B, pl.cdiv(N, tb)),
            in_specs=[
                pl.BlockSpec((None, tb, Fout), lambda bi, ni: (bi, ni, 0)),
                pl.BlockSpec((tb, 1), lambda bi, ni: (ni, 0)),
                pl.BlockSpec((tb, 1), lambda bi, ni: (ni, 0)),
            ],
            out_specs=pl.BlockSpec((None, tb, Fout), lambda bi, ni: (bi, ni, 0)),
        ),
        compiler_params=cp,
    )(h, scale, shift)
    return out


# --------------------------------------------------------------------------- #
# Reference & test
# --------------------------------------------------------------------------- #

def _init_params(key, infeat, outfeat):
    # nn.init.xavier_uniform_(W, gain=calculate_gain('relu')=sqrt(2))
    kw, kb = jax.random.split(key)
    gain = math.sqrt(2.0)
    bound_w = gain * math.sqrt(6.0 / (infeat + outfeat))
    W = jax.random.uniform(kw, (outfeat, infeat), jnp.float32, -bound_w, bound_w)
    # nn.Linear default bias init: U(-1/sqrt(fan_in), 1/sqrt(fan_in))
    bound_b = 1.0 / math.sqrt(infeat)
    b = jax.random.uniform(kb, (outfeat,), jnp.float32, -bound_b, bound_b)
    return W, b


def _reference(x, adj, W, b, mirror_bf16=False):
    """Pure-JAX f32 reference of the module forward (training-mode BN).
    mirror_bf16=True mimics the kernel's bf16 MXU inputs and bf16 h store."""
    hp = jax.lax.Precision.HIGHEST
    if mirror_bf16:
        x = x.astype(jnp.bfloat16).astype(jnp.float32)
        adj = adj.astype(jnp.bfloat16).astype(jnp.float32)
    hn = jnp.einsum("bij,bjf->bif", adj, x, precision=hp)
    h = jnp.einsum("bif,of->bio", hn, W, precision=hp) + b
    nrm = jnp.maximum(jnp.linalg.norm(h, axis=2, keepdims=True), 1e-12)
    h = jnp.maximum(h / nrm, 0.0)
    if mirror_bf16:
        h = h.astype(jnp.bfloat16).astype(jnp.float32)
    m = jnp.mean(h, axis=(0, 2), keepdims=True)
    v = jnp.mean((h - m) ** 2, axis=(0, 2), keepdims=True)
    return (h - m) * jax.lax.rsqrt(v + 1e-5)


if __name__ == "__main__":
    key = jax.random.PRNGKey(0)
    k_x, k_adj, k_p = jax.random.split(key, 3)

    B, N, Fin, Fout = 2, 8, 16, 32
    x = jax.random.normal(k_x, (B, N, Fin), jnp.float32)
    adj = (jax.random.uniform(k_adj, (B, N, N), jnp.float32) > 0.5).astype(jnp.float32)
    W, b = _init_params(k_p, Fin, Fout)

    out = jax.block_until_ready(batched_graphsage(x, adj, W, b, use_bn=True))

    # tight check against a reference that mirrors the kernel's bf16 roundings
    ref_bf = _reference(x, adj, W, b, mirror_bf16=True)
    err = float(jnp.max(jnp.abs(out - ref_bf)))
    assert jnp.allclose(out, ref_bf, atol=1e-2, rtol=1e-2), err
    # loose sanity check against the exact f32 module semantics
    ref_f32 = _reference(x, adj, W, b, mirror_bf16=False)
    assert jnp.allclose(out, ref_f32, atol=2e-1, rtol=2e-1)

    # exercise the use_bn=False path as well
    out_nobn = jax.block_until_ready(batched_graphsage(x, adj, W, b, use_bn=False))
    assert bool(jnp.all(jnp.isfinite(out_nobn)))

    print("KERNEL_OK")
</pallas_src>

<mosaic_0001>
module attributes {stable_mosaic.version = 11 : i64} {
  func.func @_sage_fused_kernel(%arg0: i32, %arg1: i32, %arg2: memref<1x8x8xf32, #tpu.memory_space<vmem>>, %arg3: memref<1x8x16xf32, #tpu.memory_space<vmem>>, %arg4: memref<16x32xf32, #tpu.memory_space<vmem>>, %arg5: memref<1x32xf32, #tpu.memory_space<vmem>>, %arg6: memref<1x8x32xbf16, #tpu.memory_space<vmem>>, %arg7: memref<1x8x1xf32, #tpu.memory_space<vmem>>, %arg8: memref<1x8x1xf32, #tpu.memory_space<vmem>>) attributes {dimension_semantics = [#tpu.dimension_semantics<parallel>, #tpu.dimension_semantics<parallel>], iteration_bounds = array<i64: 2, 1>, scalar_prefetch = 0 : i64, scratch_operands = 0 : i64, tpu.core_type = #tpu.core_type<tc>, window_params = [{transform_indices = @transform_0, window_bounds = array<i64: 1, 8, 8>}, {transform_indices = @transform_1, window_bounds = array<i64: 1, 8, 16>}, {pipeline_mode = #tpu.pipeline_mode<synchronous>, transform_indices = @transform_2, window_bounds = array<i64: 16, 32>}, {pipeline_mode = #tpu.pipeline_mode<synchronous>, transform_indices = @transform_3, window_bounds = array<i64: 1, 32>}, {transform_indices = @transform_4, window_bounds = array<i64: 1, 8, 32>}, {transform_indices = @transform_5, window_bounds = array<i64: 1, 8, 1>}, {transform_indices = @transform_6, window_bounds = array<i64: 1, 8, 1>}]} {
    %c0 = arith.constant 0 : index
    %c0_0 = arith.constant 0 : index
    %c0_1 = arith.constant 0 : index
    %0 = vector.load %arg2[%c0, %c0_0, %c0_1] : memref<1x8x8xf32, #tpu.memory_space<vmem>>, vector<1x8x8xf32>
    %1 = vector.shape_cast %0 : vector<1x8x8xf32> to vector<8x8xf32>
    %2 = arith.truncf %1 : vector<8x8xf32> to vector<8x8xbf16>
    %c0_2 = arith.constant 0 : index
    %c0_3 = arith.constant 0 : index
    %c0_4 = arith.constant 0 : index
    %3 = vector.load %arg3[%c0_2, %c0_3, %c0_4] : memref<1x8x16xf32, #tpu.memory_space<vmem>>, vector<1x8x16xf32>
    %4 = vector.shape_cast %3 : vector<1x8x16xf32> to vector<8x16xf32>
    %5 = arith.truncf %4 : vector<8x16xf32> to vector<8x16xbf16>
    %cst = arith.constant dense<0.000000e+00> : vector<8x16xf32>
    %6 = tpu.matmul %2, %5, %cst {dimension_numbers = #tpu.dot_dimension_numbers<[1], [0], [0], [1], [0, 0, 1, 1], [], []>} : vector<8x8xbf16>, vector<8x16xbf16>, vector<8x16xf32> -> vector<8x16xf32>
    %c0_5 = arith.constant 0 : index
    %c0_6 = arith.constant 0 : index
    %7 = vector.load %arg4[%c0_5, %c0_6] : memref<16x32xf32, #tpu.memory_space<vmem>>, vector<16x32xf32>
    %cst_7 = arith.constant dense<0.000000e+00> : vector<8x32xf32>
    %8 = tpu.matmul %6, %7, %cst_7 {dimension_numbers = #tpu.dot_dimension_numbers<[1], [0], [0], [1], [0, 0, 1, 1], [], []>} : vector<8x16xf32>, vector<16x32xf32>, vector<8x32xf32> -> vector<8x32xf32>
    %c0_8 = arith.constant 0 : index
    %c0_9 = arith.constant 0 : index
    %9 = vector.load %arg5[%c0_8, %c0_9] : memref<1x32xf32, #tpu.memory_space<vmem>>, vector<1x32xf32>
    %10 = vector.broadcast %9 : vector<1x32xf32> to vector<8x32xf32>
    %11 = arith.addf %8, %10 : vector<8x32xf32>
    %12 = arith.mulf %11, %11 : vector<8x32xf32>
    %cst_10 = arith.constant dense<0.000000e+00> : vector<8xf32>
    %13 = vector.multi_reduction <add>, %12, %cst_10 [1] : vector<8x32xf32> to vector<8xf32>
    %14 = vector.shape_cast %13 : vector<8xf32> to vector<8x1xf32>
    %cst_11 = arith.constant 1.000000e-24 : f32
    %15 = vector.broadcast %cst_11 : f32 to vector<8x1xf32>
    %16 = arith.maximumf %14, %15 : vector<8x1xf32>
    %17 = math.rsqrt %16 : vector<8x1xf32>
    %18 = vector.broadcast %17 : vector<8x1xf32> to vector<8x32xf32>
    %19 = arith.mulf %11, %18 : vector<8x32xf32>
    %cst_12 = arith.constant 0.000000e+00 : f32
    %20 = vector.broadcast %cst_12 : f32 to vector<8x32xf32>
    %21 = arith.maximumf %19, %20 : vector<8x32xf32>
    %22 = arith.truncf %21 : vector<8x32xf32> to vector<8x32xbf16>
    %c0_13 = arith.constant 0 : index
    %c0_14 = arith.constant 0 : index
    %c0_15 = arith.constant 0 : index
    %23 = vector.load %arg6[%c0_13, %c0_14, %c0_15] : memref<1x8x32xbf16, #tpu.memory_space<vmem>>, vector<1x8x32xbf16>
    %24 = vector.shape_cast %23 : vector<1x8x32xbf16> to vector<8x32xbf16>
    %25 = vector.shape_cast %22 : vector<8x32xbf16> to vector<1x8x32xbf16>
    tpu.vector_store %arg6[%c0_13, %c0_14, %c0_15], %25 {strides = array<i32>} : memref<1x8x32xbf16, #tpu.memory_space<vmem>>, vector<1x8x32xbf16>,
    %26 = arith.extf %22 : vector<8x32xbf16> to vector<8x32xf32>
    %cst_16 = arith.constant dense<0.000000e+00> : vector<8xf32>
    %27 = vector.multi_reduction <add>, %26, %cst_16 [1] : vector<8x32xf32> to vector<8xf32>
    %28 = vector.shape_cast %27 : vector<8xf32> to vector<8x1xf32>
    %c0_17 = arith.constant 0 : index
    %c0_18 = arith.constant 0 : index
    %c0_19 = arith.constant 0 : index
    %29 = vector.load %arg7[%c0_17, %c0_18, %c0_19] : memref<1x8x1xf32, #tpu.memory_space<vmem>>, vector<1x8x1xf32>
    %30 = vector.shape_cast %29 : vector<1x8x1xf32> to vector<8x1xf32>
    %31 = vector.shape_cast %28 : vector<8x1xf32> to vector<1x8x1xf32>
    tpu.vector_store %arg7[%c0_17, %c0_18, %c0_19], %31 {strides = array<i32>} : memref<1x8x1xf32, #tpu.memory_space<vmem>>, vector<1x8x1xf32>,
    %32 = arith.mulf %26, %26 : vector<8x32xf32>
    %cst_20 = arith.constant dense<0.000000e+00> : vector<8xf32>
    %33 = vector.multi_reduction <add>, %32, %cst_20 [1] : vector<8x32xf32> to vector<8xf32>
    %34 = vector.shape_cast %33 : vector<8xf32> to vector<8x1xf32>
    %c0_21 = arith.constant 0 : index
    %c0_22 = arith.constant 0 : index
    %c0_23 = arith.constant 0 : index
    %35 = vector.load %arg8[%c0_21, %c0_22, %c0_23] : memref<1x8x1xf32, #tpu.memory_space<vmem>>, vector<1x8x1xf32>
    %36 = vector.shape_cast %35 : vector<1x8x1xf32> to vector<8x1xf32>
    %37 = vector.shape_cast %34 : vector<8x1xf32> to vector<1x8x1xf32>
    tpu.vector_store %arg8[%c0_21, %c0_22, %c0_23], %37 {strides = array<i32>} : memref<1x8x1xf32, #tpu.memory_space<vmem>>, vector<1x8x1xf32>,
    return
  }
  func.func @transform_0(%arg0: i32, %arg1: i32) -> (i32, i32, i32) {
    %c0_i32 = arith.constant 0 : i32
    %c0_i32_0 = arith.constant 0 : i32
    return %arg0, %arg1, %c0_i32 : i32, i32, i32
  }
  func.func @transform_1(%arg0: i32, %arg1: i32) -> (i32, i32, i32) {
    %c0_i32 = arith.constant 0 : i32
    %c0_i32_0 = arith.constant 0 : i32
    %c0_i32_1 = arith.constant 0 : i32
    return %arg0, %c0_i32, %c0_i32_0 : i32, i32, i32
  }
  func.func @transform_2(%arg0: i32, %arg1: i32) -> (i32, i32) {
    %c0_i32 = arith.constant 0 : i32
    %c0_i32_0 = arith.constant 0 : i32
    %c0_i32_1 = arith.constant 0 : i32
    return %c0_i32, %c0_i32_0 : i32, i32
  }
  func.func @transform_3(%arg0: i32, %arg1: i32) -> (i32, i32) {
    %c0_i32 = arith.constant 0 : i32
    %c0_i32_0 = arith.constant 0 : i32
    %c0_i32_1 = arith.constant 0 : i32
    return %c0_i32, %c0_i32_0 : i32, i32
  }
  func.func @transform_4(%arg0: i32, %arg1: i32) -> (i32, i32, i32) {
    %c0_i32 = arith.constant 0 : i32
    %c0_i32_0 = arith.constant 0 : i32
    return %arg0, %arg1, %c0_i32 : i32, i32, i32
  }
  func.func @transform_5(%arg0: i32, %arg1: i32) -> (i32, i32, i32) {
    %c0_i32 = arith.constant 0 : i32
    %c0_i32_0 = arith.constant 0 : i32
    return %arg0, %arg1, %c0_i32 : i32, i32, i32
  }
  func.func @transform_6(%arg0: i32, %arg1: i32) -> (i32, i32, i32) {
    %c0_i32 = arith.constant 0 : i32
    %c0_i32_0 = arith.constant 0 : i32
    return %arg0, %arg1, %c0_i32 : i32, i32, i32
  }
}

</mosaic_0001>

<bundles_post_ra>
// kernel: tpu_custom_call.1
= control target key start
LH: loop header
LB: loop body
LE: loop exit
PB: predicated region body
PF: predicated region fallthrough
CT: control target
= control target key end

     0   :  { %s1348_s0 = inlined_call_operand.hbm [shape: f32[2,8,8], index: 0, kind: input, shape index: {}]   ;;  %s1349_s1 = inlined_call_operand.hbm [shape: f32[2,8,16], index: 1, kind: input, shape index: {}]   ;;  %s1350_s2 = inlined_call_operand.hbm [shape: f32[16,32], index: 2, kind: input, shape index: {}]   ;;  %s1351_s3 = inlined_call_operand.vmem [shape: f32[1,32], index: 3, kind: input, shape index: {}]   ;;  %s1352_s4 = inlined_call_operand.hbm [shape: bf16[2,8,32], index: 4, kind: output, shape index: {0}]   ;;  %s1353_s5 = inlined_call_operand.vmem [shape: f32[2,8,1], index: 5, kind: output, shape index: {1}]   ;;  %s1354_s6 = inlined_call_operand.vmem [shape: f32[2,8,1], index: 6, kind: output, shape index: {2}]  }
   0x1   :  { %1362 = sst [smem:[#allocation17_spill]] %s1350_s2 }
   0x2   :  { %12 = vsyncpa [#allocation3], 0 }
   0x3   :  { %14 = vsyncpa [#allocation3 + $0x1], 0 }
   0x4   :  { %15 = vsyncpa [#allocation6], 0 }
   0x5   :  { %17 = vsyncpa [#allocation6 + $0x1], 0 }
   0x6   :  { %18 = vsyncpa [#allocation4], 0 }
   0x7   :  { %20 = vsyncpa [#allocation4 + $0x1], 0  ;;  %s1093_s21 = smov 0   ;;  %s1095_s22 = smov 0  }
   0x8   :  { %s1097_s23 = smov 0   ;;  %s1099_s24 = smov 0  }
   0x9   :  { %s1101_s25 = smov 0   ;;  %s1103_s26 = smov 0  }
   0xa LB: > { %1363 = sst [smem:[#allocation13_spill]] %s1035_s23  ;;  %s1124_s27 = sadd.s32 4294967295, %s1047_s26   ;;  %s1047_s26 = sphi %s1103_s26, %s26_s26   ;;  %s1043_s25 = sphi %s1101_s25, %s1386_s25   ;;  %s1039_s24 = sphi %s1099_s24, %s1385_s24   ;;  %s1035_s23 = sphi %s1097_s23, %s1389_s23   ;;  %s1031_s22 = sphi %s1095_s22, %s1388_s22   ;;  %s1027_s21 = sphi %s1093_s21, %s1387_s21  }
   0xb   : > { %1364 = sst [smem:[#allocation14_spill]] %s1043_s25  ;;  %s741_s28 = sadd.s32 4294967294, %s1047_s26  }
   0xc   : > { %p60_p0 = scmp.ne.s32.totalorder %s1031_s22, %s1027_s21  ;;  %p1355_p1 = scmp.eq.s32.totalorder %s1124_s27, 0 }
   0xd   : > { %p160_p3 = scmp.eq.s32.totalorder %s741_s28, 1  ;;  %p742_p5 = scmp.ge.s32.totalorder %s1047_s26, 1 }
   0xe   : > { %p1133_p4 = por %p1355_p1, %p60_p0  ;;  %p223_p7 = scmp.lt.s32.totalorder %s1047_s26, 3 }
   0xf   : > { %p1138_p6 = por %p160_p3, %p60_p0  ;;  %s1049_s8 = smov [#allocation7]  }
  0x10   : > { %s1365_s29 = scalar_select %p1133_p4, 1, 0 }
  0x11   : > { %s1366_s30 = scalar_select %p1138_p6, 1, 0 }
  0x12   : > { %p1143_p8 = pnand %p742_p5, %p223_p7  ;;  %s235_s9 = sshll.u32 %s1049_s8, 4  ;;  %s236_s9 = int_to_ptr.vmem [resolvable:$true] %s235_s9 }
  0x13   : > { %s38_s11 = sadd.s32 1, %s1043_s25  ;;  %s1369_s2 = sld [smem:[#allocation17_spill]] }
  0x14   : > { %s1367_s7 = scalar_select %p1143_p8, 1, 0 }
  0x15   : > { %p794_p9 = pneg %p1143_p8 }
  0x17   : > { %p1152_p11 = pnand %p794_p9, %p1355_p1 }
  0x19   : > { %s869_s14 = scalar_lea.hbm %s1369_s2, 256  ;;  %p871_p13 = pneg %p1152_p11 }
  0x1a   : > { %p870_p12 = scmp.ne.s32.totalorder %s1369_s2, %s869_s14  ;;  %p876_p5 = scmp.lt.u32.totalorder %s869_s14, %s1369_s2 }
  0x1c   : > { %p872_p0 = pnand %p871_p13, %p870_p12 }
  0x1e   : > { %p873_p3 = pneg %p872_p0 }
  0x20   : > { %p878_p7 = pnand %p876_p5, %p873_p3 }
  0x22   : > { %881 = shalt.err (!%p878_p7)
}
  0x23   : > { %s882_s19 = scalar_lea.vmem %s236_s9, 256  ;;  %p890_p2 = scmp.lt.s32.totalorder %s236_s9, %s236_s9 }
  0x24   : > { %p883_p9 = scmp.ne.s32.totalorder %s236_s9, %s882_s19  ;;  %p891_p6 = scmp.lt.s32.totalorder %s882_s19, %s882_s19 }
  0x26   : > { %p885_p10 = pnand %p883_p9, %p871_p13  ;;  %p892_p4 = por %p891_p6, %p890_p2 }
  0x28   : > { %p886_p1 = pneg %p885_p10 }
  0x2a   : > { %p893_p8 = pnand %p892_p4, %p886_p1 }
  0x2c   : > { %896 = shalt.err (!%p893_p8)
}
  0x2d   : > { %s1050_s20 = smov 128   ;;  %s1051_s28 = smov 8  }
  0x2e   : > { %797 = dma.hbm_to_vmem [thread:$0]  (!%p1152_p11), %s1369_s2, 256, %s236_s9, [#allocation6], %s1050_s20, %s1050_s20, %s1051_s28  }
  0x2f   : > { %p40_p1 = scmp.ge.s32.totalorder %s38_s11, 2  ;;  %s47_s13 = sadd.s32 1, %s1035_s23 }
  0x30   : > { %p54_p2 = scmp.ne.s32.totalorder %s1035_s23, %s1031_s22  ;;  %p55_p4 = scmp.eq.s32.totalorder %s1047_s26, 0 }
  0x31   : > { %s1391_s11 = smov (%p40_p1, %s38_s11), 0  ;;  %p1372_p8 = scmp.eq.s32.totalorder %s1124_s27, 1 }
  0x32   : > { %1370 = sst [smem:[#allocation15_spill]] %s1391_s11  ;;  %p1179_p6 = por %p55_p4, %p54_p2 }
  0x33   : > { %p1185_p10 = por %p1372_p8, %p54_p2  ;;  %s42_s15 = ssub.s32 %s1043_s25, %s1391_s11 }
  0x34   : > { %p810_p11 = scmp.lt.s32.totalorder %s1047_s26, 2  ;;  %p45_p12 = scmp.eq.s32.totalorder %s42_s15, 0 }
  0x35   : > { %s1373_s10 = scalar_select %p1185_p10, 1, 0 }
  0x36   : > { %s252_s9 = sand.u32 1, %s1035_s23   ;;  %s746_s18 = sshll.u32 %s1043_s25, 7 }
  0x37   : > { %s1193_s16 = sshll.u32 %s252_s9, 3  ;;  %s1202_s28 = scalar_lea.hbm %s1348_s0, %s746_s18 }
  0x38   : > { %s1196_s17 = scalar_select %p45_p12, %s1035_s23, %s47_s13  }
  0x39   : > { %s256_s8 = scalar_lea.vmem [#allocation2], %s1193_s16  ;;  %p1209_p13 = pnand %p810_p11, %p1179_p6 }
  0x3a   : > { %1374 = sst [smem:[#allocation16_spill]] %s1196_s17  ;;  %s264_s12 = sshll.u32 %s256_s8, 4  ;;  %s1205_s12 = int_to_ptr.vmem [resolvable:$true] %s264_s12 }
  0x3b   : > { %s1216_s19 = scalar_lea.hbm %s1349_s1, %s746_s18  ;;  %s271_s20 = sand.u32 1, %s1047_s26  }
  0x3c   : > { %s253_s11 = scalar_lea.sflag [#allocation3], %s252_s9  ;;  %s897_s25 = scalar_lea.hbm %s1202_s28, 128 }
  0x3d   : > { %p898_p0 = scmp.ne.s32.totalorder %s1202_s28, %s897_s25  ;;  %p899_p3 = pneg %p1209_p13 }
  0x3e   : > { %s902_s17 = scalar_lea.hbm %s1348_s0, 256  ;;  %p903_p9 = scmp.lt.u32.totalorder %s1202_s28, %s1348_s0 }
  0x3f   : > { %p900_p5 = pnand %p899_p3, %p898_p0  ;;  %p904_p1 = scmp.lt.u32.totalorder %s902_s17, %s897_s25 }
  0x40   : > { %p906_p4 = scmp.lt.u32.totalorder %s897_s25, %s1202_s28 }
  0x41   : > { %p901_p7 = pneg %p900_p5  ;;  %p905_p2 = por %p904_p1, %p903_p9 }
  0x43   : > { %p907_p6 = por %p906_p4, %p905_p2 }
  0x45   : > { %p908_p8 = pnand %p907_p6, %p901_p7 }
  0x47   : > { %911 = shalt.err (!%p908_p8)
}
  0x48   : > { %s912_s9 = scalar_lea.vmem %s1205_s12, 128  ;;  %s1052_s18 = smov [#allocation2]  }
  0x49   : > { %p913_p11 = scmp.ne.s32.totalorder %s1205_s12, %s912_s9  ;;  %s917_s13 = sshll.u32 %s1052_s18, 4  ;;  %s918_s13 = int_to_ptr.vmem [resolvable:$false] %s917_s13 }
  0x4a   : > { %s919_s23 = scalar_lea.vmem %s918_s13, 256  ;;  %p920_p5 = scmp.lt.s32.totalorder %s1205_s12, %s918_s13 }
  0x4b   : > { %p915_p12 = pnand %p913_p11, %p899_p3  ;;  %p921_p9 = scmp.lt.s32.totalorder %s919_s23, %s912_s9 }
  0x4d   : > { %p916_p0 = pneg %p915_p12  ;;  %p922_p1 = por %p921_p9, %p920_p5 }
  0x4f   : > { %p923_p2 = pnand %p922_p1, %p916_p0 }
  0x51   : > { %926 = shalt.err (!%p923_p2)
}
  0x52   : > { %801 = dma.hbm_to_vmem [thread:$0]  (!%p1209_p13), %s1202_s28, 128, %s1205_s12, %s253_s11  }
  0x53   : > { %s275_s25 = scalar_lea.vmem [#allocation5], %s1193_s16  ;;  %s272_s14 = scalar_lea.sflag [#allocation6], %s271_s20 }
  0x54   : > { %s282_s17 = sshll.u32 %s275_s25, 4  ;;  %s927_s8 = scalar_lea.hbm %s1216_s19, 128  ;;  %s283_s17 = int_to_ptr.vmem [resolvable:$true] %s282_s17 }
  0x55   : > { %p928_p7 = scmp.ne.s32.totalorder %s1216_s19, %s927_s8  ;;  %s932_s18 = scalar_lea.hbm %s1349_s1, 256 }
  0x56   : > { %p933_p8 = scmp.lt.u32.totalorder %s1216_s19, %s1349_s1  ;;  %p934_p11 = scmp.lt.u32.totalorder %s932_s18, %s927_s8 }
  0x57   : > { %p930_p4 = pnand %p928_p7, %p899_p3  ;;  %p936_p0 = scmp.lt.u32.totalorder %s927_s8, %s1216_s19 }
  0x58   : > { %p935_p12 = por %p934_p11, %p933_p8 }
  0x59   : > { %p931_p6 = pneg %p930_p4 }
  0x5a   : > { %p937_p5 = por %p936_p0, %p935_p12 }
  0x5c   : > { %p938_p9 = pnand %p937_p5, %p931_p6 }
  0x5e   : > { %941 = shalt.err (!%p938_p9)
}
  0x5f   : > { %s942_s11 = scalar_lea.vmem %s283_s17, 128  ;;  %s1053_s16 = smov [#allocation5]  }
  0x60   : > { %p943_p1 = scmp.ne.s32.totalorder %s283_s17, %s942_s11  ;;  %s947_s28 = sshll.u32 %s1053_s16, 4  ;;  %s948_s28 = int_to_ptr.vmem [resolvable:$false] %s947_s28 }
  0x61   : > { %s949_s12 = scalar_lea.vmem %s948_s28, 256  ;;  %p950_p4 = scmp.lt.s32.totalorder %s283_s17, %s948_s28 }
  0x62   : > { %p945_p2 = pnand %p943_p1, %p899_p3  ;;  %p951_p10 = scmp.lt.s32.totalorder %s949_s12, %s942_s11 }
  0x64   : > { %p946_p7 = pneg %p945_p2  ;;  %p952_p8 = por %p951_p10, %p950_p4 }
  0x66   : > { %p953_p11 = pnand %p952_p8, %p946_p7 }
  0x68   : > { %956 = shalt.err (!%p953_p11)
}
  0x69   : > { %804 = dma.hbm_to_vmem [thread:$0]  (!%p1209_p13), %s1216_s19, 128, %s283_s17, %s272_s14  }
  0x6a   : > { %p1376_p6 = scmp.ne.s32.totalorder %s1367_s7, 0 }
  0x6b   : > { %s1269_s20 = sand.u32 (!%p1376_p6), 1, %s1031_s22   ;;  %p1377_p3 = scmp.ne.s32.totalorder (!%p1376_p6), %s1365_s29, 0 }
  0x6c   : > { %291 = sbr.rel (%p1376_p6) target bundleno = 867 (0x363), region = 36  ;;  %s750_s25 = sshll.u32 (!%p1376_p6), %s1269_s20, 3 }
  0x6d   : > { %s294_s8 = scalar_lea.sflag (!%p1376_p6), [#allocation3], %s1269_s20  ;;  %s297_s2 = scalar_lea.vmem (!%p1376_p6), [#allocation2], %s750_s25 }
  0x73   : > { %1010 = dma.done.wait (%p1377_p3), %s294_s8, 128  }
  0x74   : > { %1012 = vsyncadd (%p1377_p3), %s294_s8, 4294967168  ;;  %s302_s15 = sand.u32 1, %s1124_s27   ;;  %s306_s7 = scalar_lea.vmem [#allocation5], %s750_s25 }
  0x75   : > { %s303_s19 = scalar_lea.sflag [#allocation6], %s302_s15 }
  0x76   : > { %1014 = dma.done.wait (%p1377_p3), %s303_s19, 128  }
  0x77   : > { %1016 = vsyncadd (%p1377_p3), %s303_s19, 4294967168  ;;  %p1378_p10 = scmp.eq.s32.totalorder %s1124_s27, 0 }
  0x79   : > { %1018 = dma.done.wait (%p1378_p10), [#allocation6], 256   ;;  %p1379_p13 = pmov %p1378_p10 }
  0x7a   : > { %v1054_v0 = vmov 0.0   ;;  %vm1055_vm0 = vmmov 0   ;;  %v1056_v1 = vmov 0.0|0.0   ;;  %v375_v2 = vld [vmem:[%s306_s7] sm:$0xff]  ;;  %vm381_vm1 = vcmask 1043456   ;;  %v373_v3 = vld [vmem:[%s297_s2] sm:$0xff] }
  0x7b   : > { %1020 = vsyncadd (%p1379_p13), [#allocation6], 4294967040  ;;  %768 = vmatprep.subr.bf16.mxu0 %v1054_v0  ;;  %770 = vmatprep.mubr.msk.bf16.mxu0 %vm1055_vm0, %v1054_v0  ;;  %v425_v4 = vld [vmem:[#allocation7] sm:$0xff]  ;;  %v376_v5 = vpack.c.bf16 %v375_v2, %v375_v2  ;;  %v426_v6 = vld [vmem:[#allocation7 + $0x8] sm:$0xff]  ;;  %v374_v9 = vpack.c.bf16 %v373_v3, %v373_v3  ;;  %vm377_vm2 = vcmask 64512   ;;  %vm434_vm3 = vcmask 130048  }
  0x7c   : > { %781 = vmatprep.subr.bf16.mxu1 %v1056_v1  ;;  %778 = vmatprep.mubr.msk.f32.mxu1 %vm1055_vm0, %v1054_v0  ;;  %v782_v7 = vpack.c.bf16 %v426_v6, %v425_v4  ;;  %v757_v14 = vld [vmem:[%s1351_s3] ss:$0 sm:$0xff]  ;;  %vm509_vm4 = vcmask 261120   ;;  %s753_s17 = sshll.u32 %s1269_s20, 2  ;;  %vm518_vm5 = vcmask 257024   ;;  %s760_s9 = sshll.u32 %s1039_s24, 6 }
  0x7d   : > { %v383_v8 = vsel %vm381_vm1, %v376_v5, 0  ;;  %s339_s14 = scalar_lea.vmem [#allocation8], %s753_s17  ;;  %s1297_s23 = scalar_lea.hbm %s1352_s4, %s760_s9 }
  0x7e   : > { %769 = vmatpush3.bf16.msra.mxu0 %v383_v8  ;;  %783 = vmatpush3.bf16.msra.mxu1 %v782_v7  ;;  %s560_s11 = sshll.u32 %s339_s14, 4  ;;  %s532_s16 = scalar_lea.sflag [#allocation4], %s1269_s20  ;;  %s561_s11 = int_to_ptr.vmem [resolvable:$true] %s560_s11 }
  0x7f   : > { %s957_s28 = scalar_lea.vmem %s561_s11, 64  ;;  %p1380_p0 = scmp.ne.s32.totalorder %s1373_s10, 0 }
  0x80   : > { %p958_p12 = scmp.ne.s32.totalorder %s561_s11, %s957_s28  ;;  %s1057_s12 = smov [#allocation8]  }
  0x81   : > { %771 = vmatmul.mubr.msk.bf16.vlgmr.msra.gmra.mrb[0].mxu0 %vm377_vm2, %v374_v9  ;;  %s961_s25 = sshll.u32 %s1057_s12, 4  ;;  %s962_s25 = int_to_ptr.vmem [resolvable:$false] %s961_s25 }
  0x82   : > { %p959_p5 = pnand %p958_p12, %p1380_p0  ;;  %s963_s8 = scalar_lea.vmem %s962_s25, 128 }
  0x83   : > { %p964_p1 = scmp.lt.s32.totalorder %s561_s11, %s962_s25  ;;  %p965_p2 = scmp.lt.s32.totalorder %s963_s8, %s957_s28 }
  0x84   : > { %p960_p9 = pneg %p959_p5 }
  0x85   : > { %p966_p7 = por %p965_p2, %p964_p1 }
  0x87   : > { %p967_p4 = pnand %p966_p7, %p960_p9 }
 0x154   : > { %v419_v10 = vpop.f32.mrb[0].mxu0 }
 0x155   : > { %v772_v11 = vpop.f32.mrb[1].mxu0  ;;  %779 = vmatmul.mubr.msk.f32.vlgmr.msra.gmra.mrb[0].mxu1 %vm434_vm3, %v419_v10 }
 0x156   : > { %v422_v12 = vpop.f32.mrb[2].mxu0 }
 0x157   : > { %v773_v13 = vpop.f32.mrb[3].mxu0 }
 0x228   : > { %v504_v15 = vpop.f32.mrb[0].mxu1 }
 0x229   : > { %v505_v16 = vadd.f32 %v757_v14, %v504_v15  ;;  %v780_v17 = vpop.f32.mrb[1].mxu1 }
 0x22b   : > { %v508_v18 = vmul.f32 %v505_v16, %v505_v16 }
 0x22d   : > { %v510_v19 = vsel %vm509_vm4, %v508_v18, 0.0 }
 0x22e   : > { %511 = vadd.xlane.f32.xlu0 %v510_v19 }
 0x2bb   : > { %v512_v20 = vpop.xlane.xlu0 %511 }
 0x2bc   : > { %v513_v21 = vmax.f32 %v512_v20, 1e-24 }
 0x2be   : > { %867 = vrsqrt.f32 %v513_v21 }
 0x2c8   : > { %v868_v22 = vpop.eup %867 }
 0x2c9   : > { %v515_v23 = vmul.f32 %v868_v22, %v505_v16 }
 0x2cb   : > { %v516_v24 = vmax.f32 %v515_v23, 0.0 }
 0x2cd   : > { %v517_v25 = vpack.c.bf16 %v516_v24, %v516_v24 }
 0x2cf   : > { %v520_v26 = vunpack.c.l.bf16 %v517_v25  ;;  %519 = vst.msk [vmem:[%s339_s14] sm:$0xf] %vm518_vm5, %v517_v25 }
 0x2d1   : > { %v521_v27 = vsel %vm509_vm4, %v520_v26, 0.0  ;;  %v526_v28 = vmul.f32 %v520_v26, %v520_v26 }
 0x2d2   : > { %522 = vadd.xlane.f32.xlu0 %v521_v27 }
 0x2d3   : > { %v527_v29 = vsel %vm509_vm4, %v526_v28, 0.0 }
 0x2d4   : > { %528 = vadd.xlane.f32.xlu1 %v527_v29 }
 0x2d5   : > { %970 = shalt.err (!%p967_p4)
}
 0x2d6   : > { %s971_s20 = scalar_lea.hbm %s1297_s23, 64  ;;  %s975_s19 = scalar_lea.hbm %s1352_s4, 128 }
 0x2d7   : > { %p972_p8 = scmp.ne.s32.totalorder %s1297_s23, %s971_s20  ;;  %p976_p3 = scmp.lt.u32.totalorder %s1297_s23, %s1352_s4 }
 0x2d8   : > { %p977_p10 = scmp.lt.u32.totalorder %s975_s19, %s971_s20  ;;  %p979_p12 = scmp.lt.u32.totalorder %s971_s20, %s1297_s23 }
 0x2d9   : > { %p973_p11 = pnand %p972_p8, %p1380_p0 }
 0x2da   : > { %p978_p13 = por %p977_p10, %p976_p3 }
 0x2db   : > { %p974_p6 = pneg %p973_p11 }
 0x2dc   : > { %p980_p5 = por %p979_p12, %p978_p13 }
 0x2de   : > { %p981_p9 = pnand %p980_p5, %p974_p6 }
 0x2e0   : > { %984 = shalt.err (!%p981_p9)
}
 0x2e1   : > { %792 = dma.vmem_to_hbm [thread:$0]  (%p1380_p0), %s561_s11, 64, %s1297_s23, %s532_s16   ;;  %vm524_vm6 = vcmask 7168  }
 0x2e2   : > { %p358_p1 = scmp.lt.s32.totalorder %s1039_s24, 1 }
 0x2e4   : > { %s1393_s24 = smov (!%p358_p1, %s1039_s24), 1 }
 0x2e5   : > { %s754_s29 = sshll.u32 %s1393_s24, 3 }
 0x2e6   : > { %s364_s9 = scalar_lea.vmem %s1353_s5, %s754_s29  ;;  %s371_s28 = scalar_lea.vmem %s1354_s6, %s754_s29 }
 0x35f   : > { %v523_v30 = vpop.xlane.xlu0 %522 }
 0x360   : > { %525 = vst.msk [vmem:[%s364_s9] sm:$0xff] %vm524_vm6, %v523_v30 }
 0x361   : > { %v529_v31 = vpop.xlane.xlu1 %528 }
 0x362   : > { %530 = vst.msk [vmem:[%s371_s28] sm:$0xff] %vm524_vm6, %v529_v31 }
 0x363 PF: > { %s578_s10 = sand.u32 1, %s1027_s21   ;;  %p1381_p0 = scmp.ne.s32.totalorder %s1366_s30, 0 }
 0x364   : > { %p1382_p2 = scmp.ge.s32.totalorder %s1047_s26, 2  ;;  %s579_s24 = scalar_lea.sflag [#allocation4], %s578_s10 }
 0x366   : > { %p806_p7 = pnand %p1382_p2, %p1381_p0 }
 0x368   : > { %1022 = dma.done.wait (!%p806_p7), %s579_s24, 64  }
 0x369   : > { %1024 = vsyncadd (!%p806_p7), %s579_s24, 4294967232  ;;  %s26_s26 = sadd.s32 1, %s1047_s26   ;;  %s1383_s23 = sld [smem:[#allocation13_spill]] }
 0x36a   : > { %p23_p4 = scmp.ge.s32.totalorder %s26_s26, 4   ;;  %s1384_s11 = sld [smem:[#allocation16_spill]] }
 0x36b   : > { %s1385_s24 = sld [smem:[#allocation14_spill]]  ;;  %s1386_s25 = sld [smem:[#allocation15_spill]] }
 0x36c   : > { %s1387_s21 = smov %s1031_s22  ;;  %25 = sbr.rel (!%p23_p4) target bundleno = 10 (0xa), region = 122 }
 0x36f   : > { %s1388_s22 = smov %s1383_s23 }
 0x370   : > { %s1389_s23 = smov %s1384_s11 }
 0x373   :  { %604 = vsyncpa [#allocation3], 1 }
 0x374   :  { %606 = vsyncpa [#allocation3 + $0x1], 1 }
 0x375   :  { %607 = vsyncpa [#allocation6], 1 }
 0x376   :  { %609 = vsyncpa [#allocation6 + $0x1], 1 }
 0x377   :  { %610 = vsyncpa [#allocation4], 1 }
 0x378   :  { %612 = vsyncpa [#allocation4 + $0x1], 1 }

</bundles_post_ra>
